<compile_context>
chip_gen: v6e
topology: v6e:2x2x1
jax: 0.10.0
libtpu: 0.0.40
codegen_flags: <defaults>
</compile_context>

<pallas_src>
import jax
import jax.numpy as jnp
from jax.experimental import pallas as pl
from jax.experimental.pallas import tpu as pltpu


# ---------------------------------------------------------------------------
# Kernels
# ---------------------------------------------------------------------------

def _conv1x1_vpu_kernel(x_ref, w_ref, o_ref):
    """Tiny-C/O path (C, O <= 8): weighted channel sum on the VPU/XLU.

    x_ref: (NB, C, TL)  pixel tile for NB batch elements (TL lane-dense)
    w_ref: (O, C, 1)    weight, pre-shaped so C already sits on the sublane axis
    o_ref: (NB, O, TL)

    Per output channel: one full-tile elementwise multiply by the broadcast
    weight column (VALU, dense vregs) + a sublane (axis=1) reduction (XLU),
    instead of O*C narrow one-sublane FMAs.
    """
    x = x_ref[...].astype(jnp.float32)              # (NB, C, TL)
    w = w_ref[...].astype(jnp.float32)              # (O, C, 1)
    out_ch = w.shape[0]
    for oc in range(out_ch):                        # O <= 8 -> tiny static unroll
        col = w[oc:oc + 1]                          # (1, C, 1)
        plane = jnp.sum(x * col, axis=1, keepdims=True)   # (NB, 1, TL)
        o_ref[:, oc:oc + 1, :] = plane.astype(o_ref.dtype)


def _conv1x1_mxu_kernel(x_ref, w_ref, o_ref, acc_ref):
    """MXU path: (TO, TC) @ (TC, TL) with f32 accumulation over the C grid axis.

    x_ref: (TC, TL), w_ref: (TO, TC), o_ref: (TO, TL), acc_ref: (TO, TL) f32.
    The C (reduction) grid axis is last and marked "arbitrary".
    """
    @pl.when(pl.program_id(3) == 0)
    def _():
        acc_ref[...] = jnp.zeros_like(acc_ref)

    acc_ref[...] += jnp.dot(w_ref[...], x_ref[...],
                            preferred_element_type=jnp.float32)

    @pl.when(pl.program_id(3) == pl.num_programs(3) - 1)
    def _():
        o_ref[...] = acc_ref[...].astype(o_ref.dtype)


# ---------------------------------------------------------------------------
# Sizing helpers
# ---------------------------------------------------------------------------

def _round_up(x: int, m: int) -> int:
    return ((x + m - 1) // m) * m


def _vmem_capacity_bytes() -> int:
    """Per-generation VMEM (v7x 64 MiB, v5e/v6e 128 MiB); conservative fallback."""
    try:
        info = pltpu.get_tpu_info()
        cap = int(getattr(info, "vmem_capacity_bytes", 0) or 0)
        if cap > 0:
            return cap
    except Exception:
        pass
    return 64 * 1024 * 1024     # safe floor on every generation


def _divisor_tiles_128(l_pad: int) -> list:
    """All multiples of 128 that divide l_pad (ascending). l_pad % 128 == 0."""
    units = l_pad // 128
    return [d * 128 for d in range(1, units + 1) if units % d == 0]


def _pick_small_tiles(n, c, o, l_pad, itemsize, vmem_budget):
    """(batch block, lane tile) for the mem-bound tiny-C/O path.

    Targets ~4 MiB of HBM traffic per grid step (amortizing ~0.35us/step
    overhead; keeps the kernel at the HBM roofline), stays inside the
    generation-aware VMEM budget, and keeps >= 2 grid steps when possible so
    both v7x TensorCores get work.
    """
    per_px_hbm = (c + o) * itemsize
    # double-buffered in/out blocks + f32 working copies / temporaries
    per_px_vmem = 2 * (c + o) * itemsize + 4 * (2 * c + o)
    target_px = max(128, (4 << 20) // per_px_hbm)

    weight_bytes = 2 * o * c * 4
    budget = max(vmem_budget - weight_bytes - (2 << 20), per_px_vmem * 128)
    px_cap = max(128, budget // per_px_vmem)

    tiles = _divisor_tiles_128(l_pad)

    # Largest lane tile within the VMEM cap and ~4x the HBM target.
    tl = 128
    tl_cap = min(px_cap, 4 * target_px)
    for cand in tiles:
        if cand <= tl_cap:
            tl = cand

    # Batch block: fatten each step toward the HBM target (divisor of N).
    nb = 1
    for cand in sorted(d for d in range(1, n + 1) if n % d == 0):
        px = cand * tl
        if px > px_cap:
            break
        if cand > 1 and px > 2 * target_px:
            break
        nb = cand

    # Keep at least 2 grid steps when the problem allows (v7x has 2 TCs).
    if (n // nb) * (l_pad // tl) < 2:
        if nb > 1:
            nb = max(d for d in range(1, nb) if nb % d == 0)
        else:
            smaller = [t for t in tiles if t < tl]
            if smaller:
                tl = smaller[-1]
    return nb, tl


# ---------------------------------------------------------------------------
# Wrappers
# ---------------------------------------------------------------------------

def _conv1x1_small(x_ncl, weight_oc, vmem_budget, vmem_limit):
    """Tiny C/O (<=8): mem-bound VPU path with batch-blocked, huge lane tiles."""
    n, c, l = x_ncl.shape
    o = weight_oc.shape[0]
    itemsize = jnp.dtype(x_ncl.dtype).itemsize

    l_pad = _round_up(l, 128)
    if l_pad != l:
        x_ncl = jnp.pad(x_ncl, ((0, 0), (0, 0), (0, l_pad - l)))

    nb, tl = _pick_small_tiles(n, c, o, l_pad, itemsize, vmem_budget)
    grid = (n // nb, l_pad // tl)

    # Weight pre-shaped to (O, C, 1): C lands on the sublane axis, so the
    # kernel broadcast-multiplies with no in-kernel relayout. f32 so the tiny
    # resident block is exact regardless of input dtype.
    w3 = weight_oc.astype(jnp.float32).reshape(o, c, 1)

    out = pl.pallas_call(
        _conv1x1_vpu_kernel,
        out_shape=jax.ShapeDtypeStruct((n, o, l_pad), x_ncl.dtype),
        grid_spec=pltpu.PrefetchScalarGridSpec(
            num_scalar_prefetch=0,
            grid=grid,
            in_specs=[
                pl.BlockSpec((nb, c, tl), lambda b, t: (b, 0, t)),
                pl.BlockSpec((o, c, 1), lambda b, t: (0, 0, 0)),   # resident weight
            ],
            out_specs=pl.BlockSpec((nb, o, tl), lambda b, t: (b, 0, t)),
        ),
        compiler_params=pltpu.CompilerParams(
            dimension_semantics=("parallel", "parallel"),
            vmem_limit_bytes=vmem_limit,
        ),
    )(x_ncl, w3)

    if l_pad != l:
        out = out[:, :, :l]
    return out


def _conv1x1_mxu(x_ncl, weight_oc, vmem_budget, vmem_limit):
    """General path: tiled MXU matmul with O tiling and a C reduction grid axis."""
    n, c, l = x_ncl.shape
    o = weight_oc.shape[0]
    itemsize = jnp.dtype(x_ncl.dtype).itemsize

    l_pad = _round_up(l, 128)

    # O tile: match the 256-wide MXU on v6e/v7x (fine on v5e too); full O if smaller.
    to = o if o <= 256 else 256
    o_pad = _round_up(o, to)

    # Lane tile: biggest 128-multiple divisor of l_pad, capped at 2048.
    tl = 128
    for cand in _divisor_tiles_128(l_pad):
        if cand <= 2048:
            tl = cand

    # C (reduction) tile: single block for modest C, else 128-aligned K tiling
    # sized so double-buffered x/w blocks + out blocks + f32 accumulator fit.
    if c <= 512:
        tc, c_pad = c, c
    else:
        tc = 128
        for cand in (2048, 1024, 512, 256, 128):
            est = 2 * cand * (tl + to) * itemsize + (2 * itemsize + 4) * to * tl
            if est <= vmem_budget:
                tc = cand
                break
        c_pad = _round_up(c, tc)

    # Zero-pad: zeros contribute nothing to the reduction; padded output rows /
    # pixels are sliced off below.
    if (c_pad, l_pad) != (c, l):
        x_ncl = jnp.pad(x_ncl, ((0, 0), (0, c_pad - c), (0, l_pad - l)))
    if (o_pad, c_pad) != (o, c):
        weight_oc = jnp.pad(weight_oc, ((0, o_pad - o), (0, c_pad - c)))

    grid = (n, o_pad // to, l_pad // tl, c_pad // tc)   # reduction (C) axis last

    out = pl.pallas_call(
        _conv1x1_mxu_kernel,
        out_shape=jax.ShapeDtypeStruct((n, o_pad, l_pad), x_ncl.dtype),
        grid_spec=pltpu.PrefetchScalarGridSpec(
            num_scalar_prefetch=0,
            grid=grid,
            in_specs=[
                pl.BlockSpec((None, tc, tl), lambda b, oi, li, ci: (b, ci, li)),
                pl.BlockSpec((to, tc), lambda b, oi, li, ci: (oi, ci)),
            ],
            out_specs=pl.BlockSpec((None, to, tl), lambda b, oi, li, ci: (b, oi, li)),
            scratch_shapes=[pltpu.VMEM((to, tl), jnp.float32)],
        ),
        compiler_params=pltpu.CompilerParams(
            dimension_semantics=("parallel", "parallel", "parallel", "arbitrary"),
            vmem_limit_bytes=vmem_limit,
        ),
    )(x_ncl, weight_oc)

    if (o_pad, l_pad) != (o, l):
        out = out[:, :o, :l]
    return out


def conv1x1_forward(x_nchw: jax.Array, weight: jax.Array) -> jax.Array:
    """1x1 conv, no bias (eval-mode Dropout == identity). x: (N,C,H,W) -> (N,O,H,W)."""
    if weight.ndim == 4:                         # nn.Conv2d layout (O, C, 1, 1)
        weight = weight.reshape(weight.shape[0], weight.shape[1])
    n, c, h, w = x_nchw.shape
    o = weight.shape[0]
    l = h * w

    x_ncl = x_nchw.reshape(n, c, l)              # free reshape on contiguous NCHW

    cap = _vmem_capacity_bytes()
    vmem_budget = (cap * 3) // 4                 # size tiles against ~75% of VMEM
    vmem_limit = (cap * 17) // 20                # compiler limit ~85% (headroom)

    if c <= 8 and o <= 8:
        out_ncl = _conv1x1_small(x_ncl, weight, vmem_budget, vmem_limit)
    else:
        out_ncl = _conv1x1_mxu(x_ncl, weight, vmem_budget, vmem_limit)

    return out_ncl.reshape(n, o, h, w)


def _reference_conv1x1(x_nchw, weight_oc):
    # out[n,o,h,w] = sum_c w[o,c] * x[n,c,h,w]
    return jnp.einsum("oc,nchw->nohw", weight_oc, x_nchw)


if __name__ == "__main__":
    key = jax.random.PRNGKey(0)
    kx, kw, kx2, kw2 = jax.random.split(key, 4)

    # --- Shapes the module is used with (tiny C/O) -> VPU path --------------
    N, C, H, W = 2, 4, 16, 16
    OUT = 1
    x = jax.random.normal(kx, (N, C, H, W), dtype=jnp.float32)
    weight = jax.random.normal(kw, (OUT, C), dtype=jnp.float32) * (1.0 / jnp.sqrt(C))

    out = jax.block_until_ready(conv1x1_forward(x, weight))
    ref = _reference_conv1x1(x, weight)
    assert out.shape == (N, OUT, H, W), out.shape
    assert jnp.allclose(out, ref, atol=1e-5, rtol=1e-5), "VPU path mismatch vs reference"

    # --- Mid-size channels -> MXU path (O-tiled, C-reduction accumulator) ---
    N2, C2, H2, W2, OUT2 = 2, 32, 8, 8, 16
    x2 = jax.random.normal(kx2, (N2, C2, H2, W2), dtype=jnp.float32)
    w2 = jax.random.normal(kw2, (OUT2, C2), dtype=jnp.float32) * (1.0 / jnp.sqrt(C2))

    out2 = jax.block_until_ready(conv1x1_forward(x2, w2))
    ref2 = _reference_conv1x1(x2, w2)
    assert out2.shape == (N2, OUT2, H2, W2), out2.shape
    # Loose tolerance: the MXU may run f32 matmuls via bf16 passes.
    assert jnp.allclose(out2, ref2, atol=5e-2, rtol=5e-2), "MXU path mismatch vs reference"

    print("KERNEL_OK")
</pallas_src>

<mosaic_0001>
module attributes {stable_mosaic.version = 11 : i64} {
  func.func @_conv1x1_vpu_kernel(%arg0: i32, %arg1: i32, %arg2: memref<1x4x256xf32, #tpu.memory_space<vmem>>, %arg3: memref<1x4x1xf32, #tpu.memory_space<vmem>>, %arg4: memref<1x1x256xf32, #tpu.memory_space<vmem>>) attributes {dimension_semantics = [#tpu.dimension_semantics<parallel>, #tpu.dimension_semantics<parallel>], iteration_bounds = array<i64: 2, 1>, scalar_prefetch = 0 : i64, scratch_operands = 0 : i64, tpu.core_type = #tpu.core_type<tc>, window_params = [{transform_indices = @transform_0, window_bounds = array<i64: 1, 4, 256>}, {pipeline_mode = #tpu.pipeline_mode<synchronous>, transform_indices = @transform_1, window_bounds = array<i64: 1, 4, 1>}, {transform_indices = @transform_2, window_bounds = array<i64: 1, 1, 256>}]} {
    %c0 = arith.constant 0 : index
    %c0_0 = arith.constant 0 : index
    %c0_1 = arith.constant 0 : index
    %0 = vector.load %arg2[%c0, %c0_0, %c0_1] : memref<1x4x256xf32, #tpu.memory_space<vmem>>, vector<1x4x256xf32>
    %c0_2 = arith.constant 0 : index
    %c0_3 = arith.constant 0 : index
    %c0_4 = arith.constant 0 : index
    %1 = vector.load %arg3[%c0_2, %c0_3, %c0_4] : memref<1x4x1xf32, #tpu.memory_space<vmem>>, vector<1x4x1xf32>
    %2 = vector.broadcast %1 : vector<1x4x1xf32> to vector<1x4x256xf32>
    %3 = arith.mulf %0, %2 : vector<1x4x256xf32>
    %cst = arith.constant dense<0.000000e+00> : vector<1x256xf32>
    %4 = vector.multi_reduction <add>, %3, %cst [1] : vector<1x4x256xf32> to vector<1x256xf32>
    %5 = vector.shape_cast %4 : vector<1x256xf32> to vector<1x1x256xf32>
    %c0_5 = arith.constant 0 : index
    %c0_6 = arith.constant 0 : index
    %c0_7 = arith.constant 0 : index
    %6 = vector.load %arg4[%c0_5, %c0_6, %c0_7] : memref<1x1x256xf32, #tpu.memory_space<vmem>>, vector<1x1x256xf32>
    tpu.vector_store %arg4[%c0_5, %c0_6, %c0_7], %5 {strides = array<i32>} : memref<1x1x256xf32, #tpu.memory_space<vmem>>, vector<1x1x256xf32>,
    return
  }
  func.func @transform_0(%arg0: i32, %arg1: i32) -> (i32, i32, i32) {
    %c0_i32 = arith.constant 0 : i32
    %c0_i32_0 = arith.constant 0 : i32
    return %arg0, %c0_i32, %arg1 : i32, i32, i32
  }
  func.func @transform_1(%arg0: i32, %arg1: i32) -> (i32, i32, i32) {
    %c0_i32 = arith.constant 0 : i32
    %c0_i32_0 = arith.constant 0 : i32
    %c0_i32_1 = arith.constant 0 : i32
    %c0_i32_2 = arith.constant 0 : i32
    return %c0_i32, %c0_i32_0, %c0_i32_1 : i32, i32, i32
  }
  func.func @transform_2(%arg0: i32, %arg1: i32) -> (i32, i32, i32) {
    %c0_i32 = arith.constant 0 : i32
    %c0_i32_0 = arith.constant 0 : i32
    return %arg0, %c0_i32, %arg1 : i32, i32, i32
  }
}

</mosaic_0001>

<bundles_post_ra>
// kernel: tpu_custom_call.1
= control target key start
LH: loop header
LB: loop body
LE: loop exit
PB: predicated region body
PF: predicated region fallthrough
CT: control target
= control target key end

     0   :  { %7 = vsyncpa [#allocation3], 0  ;;  %s688_s0 = inlined_call_operand.hbm [shape: f32[2,4,256], index: 0, kind: input, shape index: {}]   ;;  %s689_s1 = inlined_call_operand.vmem [shape: f32[1,4,1], index: 1, kind: input, shape index: {}]   ;;  %s690_s2 = inlined_call_operand.hbm [shape: f32[2,1,256], index: 2, kind: output, shape index: {}]  }
   0x1   :  { %9 = vsyncpa [#allocation3 + $0x1], 0 }
   0x2   :  { %10 = vsyncpa [#allocation4], 0 }
   0x3   :  { %12 = vsyncpa [#allocation4 + $0x1], 0  ;;  %s550_s9 = smov 0   ;;  %s552_s10 = smov 0  }
   0x4   :  { %s554_s11 = smov 0   ;;  %s556_s12 = smov 0  }
   0x5   :  { %s558_s13 = smov 0   ;;  %s560_s14 = smov 0  }
   0x6 LB: > { %s337_s15 = sadd.s32 4294967295, %s528_s14   ;;  %s338_s16 = sadd.s32 4294967294, %s528_s14   ;;  %s528_s14 = sphi %s560_s14, %s18_s14   ;;  %s524_s13 = sphi %s558_s13, %s702_s13   ;;  %s520_s12 = sphi %s556_s12, %s701_s12   ;;  %s516_s11 = sphi %s554_s11, %s700_s11   ;;  %s512_s10 = sphi %s552_s10, %s699_s10   ;;  %s508_s9 = sphi %s550_s9, %s698_s9  }
   0x7   : > { %s30_s17 = sadd.s32 1, %s524_s13  ;;  %s39_s18 = sadd.s32 1, %s516_s11 }
   0x8   : > { %p32_p0 = scmp.ge.s32.totalorder %s30_s17, 2  ;;  %p46_p1 = scmp.ne.s32.totalorder %s516_s11, %s512_s10 }
   0x9   : > { %p47_p2 = scmp.eq.s32.totalorder %s528_s14, 0  ;;  %p52_p3 = scmp.ne.s32.totalorder %s512_s10, %s508_s9 }
   0xa   : > { %s704_s17 = smov (%p32_p0, %s30_s17), 0  ;;  %p53_p5 = scmp.eq.s32.totalorder %s337_s15, 0 }
   0xb   : > { %p591_p4 = por %p47_p2, %p46_p1  ;;  %s34_s20 = ssub.s32 %s524_s13, %s704_s17 }
   0xc   : > { %p99_p6 = scmp.eq.s32.totalorder %s337_s15, 1  ;;  %p37_p7 = scmp.eq.s32.totalorder %s34_s20, 0 }
   0xd   : > { %p597_p8 = por %p53_p5, %p52_p3  ;;  %p105_p10 = scmp.eq.s32.totalorder %s338_s16, 1 }
   0xe   : > { %p601_p9 = por %p99_p6, %p46_p1  ;;  %p366_p13 = scmp.lt.s32.totalorder %s528_s14, 2 }
   0xf   : > { %s606_s23 = scalar_select %p37_p7, %s516_s11, %s39_s18  }
  0x10   : > { %p608_p11 = por %p105_p10, %p52_p3  ;;  %s128_s25 = sand.u32 1, %s516_s11  }
  0x11   : > { %s341_s26 = sshll.u32 %s128_s25, 3  ;;  %s352_s27 = sshll.u32 %s524_s13, 7 }
  0x12   : > { %s694_s24 = scalar_select %p608_p11, 1, 0 }
  0x13   : > { %s140_s30 = scalar_lea.hbm %s688_s0, %s352_s27  ;;  %s132_s3 = scalar_lea.vmem [#allocation2], %s341_s26 }
  0x14   : > { %s142_s4 = sshll.u32 %s132_s3, 4  ;;  %p621_p0 = pnand %p366_p13, %p591_p4  ;;  %s143_s4 = int_to_ptr.vmem [resolvable:$true] %s142_s4 }
  0x15   : > { %p344_p1 = scmp.ge.s32.totalorder %s528_s14, 1  ;;  %p147_p2 = scmp.lt.s32.totalorder %s528_s14, 3 }
  0x16   : > { %s129_s6 = scalar_lea.sflag [#allocation3], %s128_s25  ;;  %p422_p3 = pneg %p621_p0 }
  0x17   : > { %s433_s7 = scalar_lea.vmem %s143_s4, 128  ;;  %s530_s8 = smov [#allocation2]  }
  0x18   : > { %p434_p5 = scmp.ne.s32.totalorder %s143_s4, %s433_s7  ;;  %s438_s15 = sshll.u32 %s530_s8, 4  ;;  %s439_s15 = int_to_ptr.vmem [resolvable:$false] %s438_s15 }
  0x19   : > { %s440_s16 = scalar_lea.vmem %s439_s15, 256  ;;  %p441_p10 = scmp.lt.s32.totalorder %s143_s4, %s439_s15 }
  0x1a   : > { %p436_p6 = pnand %p434_p5, %p422_p3  ;;  %p442_p12 = scmp.lt.s32.totalorder %s440_s16, %s433_s7 }
  0x1c   : > { %p437_p7 = pneg %p436_p6  ;;  %p443_p4 = por %p442_p12, %p441_p10 }
  0x1e   : > { %p444_p13 = pnand %p443_p4, %p437_p7 }
  0x20   : > { %447 = shalt.err (!%p444_p13)
}
  0x21   : > { %361 = dma.hbm_to_vmem [thread:$0]  (!%p621_p0), %s140_s30, 128, %s143_s4, %s129_s6  }
  0x22   : > { %p148_p11 = pnand %p344_p1, %p147_p2 }
  0x23   : > { %s636_s18 = sand.u32 (!%p148_p11), 1, %s512_s10  }
  0x24   : > { %151 = sbr.rel (%p148_p11) target bundleno = 206 (0xce), region = 28  ;;  %s345_s19 = sshll.u32 (!%p148_p11), %s636_s18, 3 }
  0x25   : > { %s154_s20 = scalar_lea.sflag (!%p148_p11), [#allocation3], %s636_s18  ;;  %s157_s25 = scalar_lea.vmem (!%p148_p11), [#allocation2], %s345_s19 }
  0x29   : > { %499 = dma.done.wait (%p597_p8), %s154_s20, 128  }
  0x2a   : > { %501 = vsyncadd (%p597_p8), %s154_s20, 4294967168  ;;  %v531_v0 = vmov 0   ;;  %v181_v1 = vld [vmem:[%s689_s1] sm:$0xf]  ;;  %v532_v2 = vmov 839922192   ;;  %v189_v4 = vlaneseq }
  0x2b   : > { %419 = vset.pattern.permute.xlu0 %v531_v0  ;;  %v187_v3 = vunpack.c.l.s4 %v532_v2  ;;  %v180_v9 = vld [vmem:[%s157_s25] sm:$0xff]  ;;  %vm198_vm0 = vcmask 1043456   ;;  %v533_v18 = vmov 1966171168   ;;  %s346_s21 = sshll.u32 %s636_s18, 1  ;;  %s353_s28 = sshll.u32 %s520_s12, 5 }
  0x2c   : > { %184 = vperm.xlu0 %419, %v181_v1   ;;  %v190_v6 = vshrl.u32 %v189_v4, 7  ;;  %v217_v19 = vunpack.c.l.s4 %v533_v18  ;;  %s177_s29 = scalar_lea.vmem [#allocation5], %s346_s21  ;;  %vm233_vm1 = vcmp.lt.s32.totalorder %v189_v4, 256  ;;  %s251_s5 = scalar_lea.hbm %s690_s2, %s353_s28 }
  0x2d   : > { %v188_v5 = vunpack.c.0.s8 %v187_v3  ;;  %s253_s30 = sshll.u32 %s177_s29, 4  ;;  %s237_s6 = scalar_lea.sflag [#allocation4], %s636_s18  ;;  %s254_s30 = int_to_ptr.vmem [resolvable:$true] %s253_s30 }
  0x2e   : > { %v218_v24 = vunpack.c.0.s8 %v217_v19  ;;  %s448_s7 = scalar_lea.vmem %s254_s30, 32  ;;  %s534_s8 = smov [#allocation5]  }
  0x2f   : > { %v191_v7 = vsub.s32 %v188_v5, %v190_v6  ;;  %p449_p8 = scmp.ne.s32.totalorder %s254_s30, %s448_s7  ;;  %s452_s15 = sshll.u32 %s534_s8, 4  ;;  %s453_s15 = int_to_ptr.vmem [resolvable:$false] %s452_s15 }
  0x30   : > { %v221_v28 = vsub.s32 %v218_v24, %v190_v6  ;;  %s454_s12 = scalar_lea.vmem %s453_s15, 64  ;;  %p455_p0 = scmp.lt.s32.totalorder %s254_s30, %s453_s15 }
  0x31   : > { %p450_p11 = pnand %p449_p8, %p601_p9  ;;  %p456_p1 = scmp.lt.s32.totalorder %s454_s12, %s448_s7 }
  0x33   : > { %p451_p12 = pneg %p450_p11  ;;  %p457_p2 = por %p456_p1, %p455_p0 }
  0x35   : > { %p458_p3 = pnand %p457_p2, %p451_p12 }
  0xa7   : > { %v185_v8 = vpop.permute.xlu0 %184 }
  0xa8   : > { %v192_v10 = vrot.slane %v185_v8, %v191_v7 }
  0xaa   : > { %v194_v11 = vmul.f32 %v192_v10, %v180_v9 }
  0xac   : > { %v196_v12 = vcombine.high %v194_v11, %v194_v11  ;;  %v199_v13 = vsel %vm198_vm0, %v194_v11, 0.0 }
  0xad   : > { %v200_v14 = vrot.slane %v199_v13, 4 }
  0xae   : > { %v206_v15 = vsel %vm198_vm0, %v196_v12, 0.0 }
  0xaf   : > { %v201_v16 = vadd.f32 %v200_v14, %v199_v13  ;;  %v207_v17 = vrot.slane %v206_v15, 4 }
  0xb1   : > { %v202_v20 = vrot.slane %v201_v16, 2  ;;  %v208_v21 = vadd.f32 %v207_v17, %v206_v15 }
  0xb3   : > { %v203_v22 = vadd.f32 %v202_v20, %v201_v16  ;;  %v209_v23 = vrot.slane %v208_v21, 2 }
  0xb5   : > { %v204_v25 = vrot.slane %v203_v22, 1  ;;  %v210_v26 = vadd.f32 %v209_v23, %v208_v21 }
  0xb7   : > { %v211_v27 = vrot.slane %v210_v26, 1  ;;  %v205_v29 = vadd.f32 %v204_v25, %v203_v22 }
  0xb9   : > { %v212_v30 = vadd.f32 %v211_v27, %v210_v26 }
  0xbb   : > { %v215_v31 = vcombine.low %v205_v29, %v212_v30 }
  0xbd   : > { %v222_v32 = vrot.slane %v215_v31, %v221_v28 }
  0xbf   : > { %v229_v33 = vrot.slane %v222_v32, %v221_v28 }
  0xc1   : > { %235 = vst.msk [vmem:[%s177_s29] sm:$0x3] %vm233_vm1, %v229_v33 }
  0xc2   : > { %461 = shalt.err (!%p458_p3)
}
  0xc3   : > { %s462_s16 = scalar_lea.hbm %s251_s5, 32  ;;  %s466_s20 = scalar_lea.hbm %s690_s2, 64 }
  0xc4   : > { %p463_p5 = scmp.ne.s32.totalorder %s251_s5, %s462_s16  ;;  %p467_p10 = scmp.lt.s32.totalorder %s251_s5, %s690_s2 }
  0xc5   : > { %p468_p4 = scmp.lt.s32.totalorder %s466_s20, %s462_s16 }
  0xc6   : > { %p464_p6 = pnand %p463_p5, %p601_p9 }
  0xc7   : > { %p469_p13 = por %p468_p4, %p467_p10 }
  0xc8   : > { %p465_p7 = pneg %p464_p6 }
  0xca   : > { %p470_p8 = pnand %p469_p13, %p465_p7 }
  0xcc   : > { %473 = shalt.err (!%p470_p8)
}
  0xcd   : > { %356 = dma.vmem_to_hbm [thread:$0]  (%p601_p9), %s254_s30, 32, %s251_s5, %s237_s6  }
  0xce PF: > { %s265_s27 = sand.u32 1, %s508_s9   ;;  %p696_p11 = scmp.ne.s32.totalorder %s694_s24, 0 }
  0xcf   : > { %p697_p12 = scmp.ge.s32.totalorder %s528_s14, 2  ;;  %s266_s21 = scalar_lea.sflag [#allocation4], %s265_s27 }
  0xd1   : > { %p363_p0 = pnand %p697_p12, %p696_p11 }
  0xd3   : > { %p364_p1 = pneg %p363_p0 }
  0xd5   : > { %503 = dma.done.wait (%p364_p1), %s266_s21, 32  }
  0xd6   : > { %505 = vsyncadd (%p364_p1), %s266_s21, 4294967264  ;;  %s18_s14 = sadd.s32 1, %s528_s14   ;;  %s698_s9 = smov %s512_s10 }
  0xd7   : > { %p15_p2 = scmp.ge.s32.totalorder %s18_s14, 4   ;;  %s699_s10 = smov %s516_s11 }
  0xd8   : > { %s700_s11 = smov %s606_s23  ;;  %s701_s12 = smov %s524_s13 }
  0xd9   : > { %s702_s13 = smov %s704_s17  ;;  %17 = sbr.rel (!%p15_p2) target bundleno = 6 (0x6), region = 73 }
  0xde   :  { %271 = vsyncpa [#allocation3], 1 }
  0xdf   :  { %273 = vsyncpa [#allocation3 + $0x1], 1 }
  0xe0   :  { %274 = vsyncpa [#allocation4], 1 }
  0xe1   :  { %276 = vsyncpa [#allocation4 + $0x1], 1 }

</bundles_post_ra>
